<compile_context>
chip_gen: v5e
topology: v5e:2x2
jax: 0.10.0
libtpu: 0.0.40
codegen_flags: <defaults>
</compile_context>

<pallas_src>
import functools

import jax
import jax.numpy as jnp
from jax import lax
from jax.experimental import pallas as pl
from jax.experimental.pallas import tpu as pltpu

H1, H2 = 64, 32  # hidden sizes from the PyTorch module


def _round_up(n: int, m: int) -> int:
    return ((n + m - 1) // m) * m


def _cdiv(a: int, b: int) -> int:
    return -(-a // b)


def _vmem_budget_bytes() -> int:
    """VMEM budget used for tile sizing: ~3/4 of physical VMEM.

    Falls back to the v7x per-TensorCore capacity (64 MiB, the smallest of the
    supported generations) when the query is unavailable, so the plan is safe
    everywhere: ~48 MiB on v7x, ~96 MiB on v5e/v6e (128 MiB VMEM).
    """
    phys = 64 * 1024 * 1024
    try:
        if jax.devices()[0].platform == "tpu":
            phys = int(pltpu.get_tpu_info().vmem_capacity_bytes)
    except Exception:
        pass
    return min(phys * 3 // 4, 96 * 1024 * 1024)


def _plan_tiling(batch: int, obs_dim: int, a_pad: int):
    """Pick (tile_b, num_tiles, padded_batch) from a VMEM budget."""
    # Per-lane VMEM bytes: double-buffered x (bf16) + action (int32) DMA slabs
    # plus an upper bound on live in-kernel intermediates (h1/h2/logits/noise).
    per_lane = (2 * (obs_dim * 2 + 4)
                + H1 * 6 + H2 * 6          # f32 + bf16 copies of h1 / h2
                + a_pad * 16)              # logits / scores / hash temporaries
    budget = _vmem_budget_bytes()
    tile_cap = max(128, (budget // per_lane) // 128 * 128)

    padded = _round_up(batch, 128)
    num_tiles = _cdiv(padded, min(tile_cap, padded))
    if padded >= 256:
        # Keep >= 2 (and an even number of) grid steps so
        # dimension_semantics=("parallel",) can shard them across v7x's two
        # TensorCores; costs at most one ~0.35us extra step on v5e/v6e.
        num_tiles = max(num_tiles, 2)
        num_tiles += num_tiles % 2
    tile_b = _round_up(_cdiv(padded, num_tiles), 128)
    return tile_b, num_tiles, tile_b * num_tiles, per_lane, budget


def _policy_kernel(seed_ref, x_ref, w1_ref, b1_ref, w2_ref, b2_ref,
                   w3_ref, b3_ref, act_ref, *, n_actions: int, training: bool):
    # x_ref: (obs_dim, TILE_B) bf16, batch on the lane axis.  Weights are in
    # PyTorch (out, in) layout so each layer is h = W @ x + b, which keeps the
    # batch on lanes all the way to the lane-dense output row.
    x = x_ref[...]
    h1 = jnp.dot(w1_ref[...], x, preferred_element_type=jnp.float32) + b1_ref[...]
    h1 = jnp.maximum(h1, 0.0).astype(jnp.bfloat16)
    h2 = jnp.dot(w2_ref[...], h1, preferred_element_type=jnp.float32) + b2_ref[...]
    h2 = jnp.maximum(h2, 0.0).astype(jnp.bfloat16)
    logits = jnp.dot(w3_ref[...], h2, preferred_element_type=jnp.float32) + b3_ref[...]
    # logits: (A_PAD, TILE_B) f32; rows >= n_actions are zero padding and are
    # never inspected by the argmax chain below.

    if training:
        # Categorical(logits).sample() via the Gumbel-max trick.  Noise comes
        # from a stateless splitmix32-style hash of (seed, element index) --
        # pure jnp/lax ops, so it lowers on Mosaic and in interpret mode.
        a_pad, tile_b = logits.shape
        row = lax.broadcasted_iota(jnp.int32, (a_pad, tile_b), 0).astype(jnp.uint32)
        col = lax.broadcasted_iota(jnp.int32, (a_pad, tile_b), 1).astype(jnp.uint32)
        pid = pl.program_id(0).astype(jnp.uint32)
        idx = (pid * jnp.uint32(a_pad) + row) * jnp.uint32(tile_b) + col
        seed_u = seed_ref[0].astype(jnp.uint32)

        z = idx * jnp.uint32(0x9E3779B1) + seed_u * jnp.uint32(0x85EBCA77) + jnp.uint32(1)
        z = (z ^ (z >> 16)) * jnp.uint32(0x7FEB352D)    # unsigned -> logical shifts
        z = (z ^ (z >> 15)) * jnp.uint32(0x846CA68B)
        z = z ^ (z >> 16)

        # 24 random bits -> uniform in [0, 1) (exact in f32).
        u = (z >> 8).astype(jnp.int32).astype(jnp.float32) * jnp.float32(1.0 / (1 << 24))
        u = jnp.maximum(u, jnp.float32(1e-7))            # avoid log(0)
        scores = logits - jnp.log(-jnp.log(u))           # logits + Gumbel noise
    else:
        scores = logits

    # argmax over the small, static action axis: unrolled VPU compare chain ->
    # first maximal index (matches torch.argmax), always in [0, n_actions).
    best_val = scores[0:1, :]                            # (1, TILE_B)
    best_idx = jnp.zeros(best_val.shape, jnp.int32)
    for a in range(1, n_actions):
        v = scores[a:a + 1, :]
        take = v > best_val
        best_val = jnp.where(take, v, best_val)
        best_idx = jnp.where(take, jnp.int32(a), best_idx)
    act_ref[...] = best_idx                              # lane-dense store


def init_policy_params(key, obs_dim, n_actions):
    """nn.Linear-style uniform init; weights kept in PyTorch (out, in) layout."""
    dims = [(obs_dim, H1), (H1, H2), (H2, n_actions)]
    params = []
    for i, (din, dout) in enumerate(dims):
        kw, kb = jax.random.split(jax.random.fold_in(key, i))
        bound = 1.0 / float(din) ** 0.5
        w = jax.random.uniform(kw, (dout, din), jnp.float32, -bound, bound)
        b = jax.random.uniform(kb, (dout, 1), jnp.float32, -bound, bound)
        params.append((w, b))
    return params


@functools.partial(jax.jit, static_argnames=("training",))
def policy_forward(x, params, seed, training: bool):
    """Returns int32 actions of shape (batch,)."""
    (w1, b1), (w2, b2), (w3, b3) = params
    batch, obs_dim = x.shape
    n_actions = w3.shape[0]
    a_pad = _round_up(max(n_actions, 1), 8)   # sublane-aligned logits rows

    tile_b, num_tiles, padded, per_lane, budget = _plan_tiling(batch, obs_dim, a_pad)

    # Batch on lanes; cast to bf16 BEFORE transpose/pad so the staging copy of
    # x is 2 bytes/elem (the pad itself is negligible).
    x_t = jnp.pad(x.astype(jnp.bfloat16).T, ((0, 0), (0, padded - batch)))
    w1b, w2b = w1.astype(jnp.bfloat16), w2.astype(jnp.bfloat16)
    # Zero-pad the last layer to a_pad output rows (clean vreg layout for the
    # logits tile); the argmax loop is bounded by n_actions so padding rows
    # can never be selected.
    w3b = jnp.pad(w3, ((0, a_pad - n_actions), (0, 0))).astype(jnp.bfloat16)
    b3p = jnp.pad(b3, ((0, a_pad - n_actions), (0, 0)))
    seed_arr = jnp.reshape(jnp.asarray(seed, jnp.int32), (1,))

    kernel = functools.partial(_policy_kernel, n_actions=n_actions,
                               training=training)

    flops = 2 * padded * (obs_dim * H1 + H1 * H2 + H2 * a_pad)
    weight_bytes = ((w1b.size + w2b.size + w3b.size) * 2
                    + (b1.size + b2.size + b3p.size) * 4)
    bytes_accessed = x_t.size * 2 + padded * 4 + weight_bytes + 4
    cost = pl.CostEstimate(
        flops=flops,
        transcendentals=(2 * padded * a_pad) if training else 0,
        bytes_accessed=bytes_accessed)

    # vmem_limit derived from the real working set, clamped to the per-
    # generation budget (<=48 MiB on v7x, <=96 MiB on v5e/v6e).
    working_set = tile_b * per_lane + weight_bytes
    vmem_limit = int(max(16 << 20, min(budget, working_set + (8 << 20))))

    const = lambda i, seed: (0, 0)  # weights/biases stay VMEM-resident
    grid_spec = pltpu.PrefetchScalarGridSpec(
        num_scalar_prefetch=1,
        grid=(num_tiles,),
        in_specs=[
            # TODO(synk): if the x DMA shows up exposed in a bundle dump, bump
            # this stream only with pipeline_mode=pl.Buffered(3).
            pl.BlockSpec((obs_dim, tile_b), lambda i, seed: (0, i)),  # x.T
            pl.BlockSpec((H1, obs_dim), const),                       # w1
            pl.BlockSpec((H1, 1), const),                             # b1
            pl.BlockSpec((H2, H1), const),                            # w2
            pl.BlockSpec((H2, 1), const),                             # b2
            pl.BlockSpec((a_pad, H2), const),                         # w3 (padded)
            pl.BlockSpec((a_pad, 1), const),                          # b3 (padded)
        ],
        out_specs=pl.BlockSpec((1, tile_b), lambda i, seed: (0, i)),
    )

    actions = pl.pallas_call(
        kernel,
        out_shape=jax.ShapeDtypeStruct((1, padded), jnp.int32),
        grid_spec=grid_spec,
        compiler_params=pltpu.CompilerParams(
            dimension_semantics=("parallel",),
            vmem_limit_bytes=vmem_limit),
        cost_estimate=cost,
    )(seed_arr, x_t, w1b, b1, w2b, b2, w3b, b3p)

    # TODO(synk): PyTorch returns int64 actions; int32 is returned here (an
    # int8 kernel writeback would cut the output HBM traffic 4x but int32 is
    # kept for lowering robustness of the single-row (1, TILE_B) store).
    return actions[0, :batch]


def _reference_logits(x, params):
    """Pure-JAX reference mirroring the kernel numerics (bf16 ops, f32 acc)."""
    (w1, b1), (w2, b2), (w3, b3) = params
    xt = x.T.astype(jnp.bfloat16)
    h1 = jnp.maximum(jnp.dot(w1.astype(jnp.bfloat16), xt,
                             preferred_element_type=jnp.float32) + b1, 0.0)
    h1 = h1.astype(jnp.bfloat16)
    h2 = jnp.maximum(jnp.dot(w2.astype(jnp.bfloat16), h1,
                             preferred_element_type=jnp.float32) + b2, 0.0)
    h2 = h2.astype(jnp.bfloat16)
    return jnp.dot(w3.astype(jnp.bfloat16), h2,
                   preferred_element_type=jnp.float32) + b3  # (A, batch)


if __name__ == "__main__":
    key = jax.random.PRNGKey(0)
    k_param, k_x = jax.random.split(key)

    batch, obs_dim, n_actions = 8, 4, 2   # CartPole-like env
    params = init_policy_params(k_param, obs_dim, n_actions)
    x = jax.random.normal(k_x, (batch, obs_dim), jnp.float32)

    # Eval mode: greedy argmax.
    act_eval = jax.block_until_ready(policy_forward(x, params, 0, training=False))
    # Training mode: Categorical sample via in-kernel Gumbel-max.
    act_train = jax.block_until_ready(policy_forward(x, params, 1234, training=True))

    # Check the eval path against a pure-JAX reference with matching numerics;
    # tolerate disagreement only where the top-2 logit gap is a near-tie.
    ref_logits = _reference_logits(x, params)                # (A, batch)
    ref_act = jnp.argmax(ref_logits, axis=0).astype(jnp.int32)
    srt = jnp.sort(ref_logits, axis=0)
    gap = srt[-1] - srt[-2]
    ok = (act_eval == ref_act) | (gap < 1e-3)
    assert bool(jnp.all(ok)), (act_eval, ref_act)
    assert act_eval.shape == (batch,) and act_train.shape == (batch,)
    assert bool(jnp.all((act_eval >= 0) & (act_eval < n_actions)))
    assert bool(jnp.all((act_train >= 0) & (act_train < n_actions)))

    print("KERNEL_OK")
</pallas_src>

<mosaic_0001>
module attributes {stable_mosaic.version = 11 : i64} {
  func.func @_policy_kernel(%arg0: i32, %arg1: memref<1xi32, #tpu.memory_space<smem>>, %arg2: memref<4x128xbf16, #tpu.memory_space<vmem>>, %arg3: memref<64x4xbf16, #tpu.memory_space<vmem>>, %arg4: memref<64x1xf32, #tpu.memory_space<vmem>>, %arg5: memref<32x64xbf16, #tpu.memory_space<vmem>>, %arg6: memref<32x1xf32, #tpu.memory_space<vmem>>, %arg7: memref<8x32xbf16, #tpu.memory_space<vmem>>, %arg8: memref<8x1xf32, #tpu.memory_space<vmem>>, %arg9: memref<1x128xi32, #tpu.memory_space<vmem>>) attributes {dimension_semantics = [#tpu.dimension_semantics<parallel>], iteration_bounds = array<i64: 1>, scalar_prefetch = 1 : i64, scratch_operands = 0 : i64, tpu.core_type = #tpu.core_type<tc>, window_params = [{transform_indices = @transform_0, window_bounds = array<i64: 4, 128>}, {pipeline_mode = #tpu.pipeline_mode<synchronous>, transform_indices = @transform_1, window_bounds = array<i64: 64, 4>}, {pipeline_mode = #tpu.pipeline_mode<synchronous>, transform_indices = @transform_2, window_bounds = array<i64: 64, 1>}, {pipeline_mode = #tpu.pipeline_mode<synchronous>, transform_indices = @transform_3, window_bounds = array<i64: 32, 64>}, {pipeline_mode = #tpu.pipeline_mode<synchronous>, transform_indices = @transform_4, window_bounds = array<i64: 32, 1>}, {pipeline_mode = #tpu.pipeline_mode<synchronous>, transform_indices = @transform_5, window_bounds = array<i64: 8, 32>}, {pipeline_mode = #tpu.pipeline_mode<synchronous>, transform_indices = @transform_6, window_bounds = array<i64: 8, 1>}, {transform_indices = @transform_7, window_bounds = array<i64: 1, 128>}]} {
    %c0 = arith.constant 0 : index
    %c0_0 = arith.constant 0 : index
    %0 = vector.load %arg2[%c0, %c0_0] : memref<4x128xbf16, #tpu.memory_space<vmem>>, vector<4x128xbf16>
    %c0_1 = arith.constant 0 : index
    %c0_2 = arith.constant 0 : index
    %1 = vector.load %arg3[%c0_1, %c0_2] : memref<64x4xbf16, #tpu.memory_space<vmem>>, vector<64x4xbf16>
    %cst = arith.constant dense<0.000000e+00> : vector<64x128xf32>
    %2 = tpu.matmul %1, %0, %cst {dimension_numbers = #tpu.dot_dimension_numbers<[1], [0], [0], [1], [0, 0, 1, 1], [], []>} : vector<64x4xbf16>, vector<4x128xbf16>, vector<64x128xf32> -> vector<64x128xf32>
    %c0_3 = arith.constant 0 : index
    %c0_4 = arith.constant 0 : index
    %3 = vector.load %arg4[%c0_3, %c0_4] : memref<64x1xf32, #tpu.memory_space<vmem>>, vector<64x1xf32>
    %4 = vector.broadcast %3 : vector<64x1xf32> to vector<64x128xf32>
    %5 = arith.addf %2, %4 : vector<64x128xf32>
    %cst_5 = arith.constant 0.000000e+00 : f32
    %6 = vector.broadcast %cst_5 : f32 to vector<64x128xf32>
    %7 = arith.maximumf %5, %6 : vector<64x128xf32>
    %8 = arith.truncf %7 : vector<64x128xf32> to vector<64x128xbf16>
    %c0_6 = arith.constant 0 : index
    %c0_7 = arith.constant 0 : index
    %9 = vector.load %arg5[%c0_6, %c0_7] : memref<32x64xbf16, #tpu.memory_space<vmem>>, vector<32x64xbf16>
    %cst_8 = arith.constant dense<0.000000e+00> : vector<32x128xf32>
    %10 = tpu.matmul %9, %8, %cst_8 {dimension_numbers = #tpu.dot_dimension_numbers<[1], [0], [0], [1], [0, 0, 1, 1], [], []>} : vector<32x64xbf16>, vector<64x128xbf16>, vector<32x128xf32> -> vector<32x128xf32>
    %c0_9 = arith.constant 0 : index
    %c0_10 = arith.constant 0 : index
    %11 = vector.load %arg6[%c0_9, %c0_10] : memref<32x1xf32, #tpu.memory_space<vmem>>, vector<32x1xf32>
    %12 = vector.broadcast %11 : vector<32x1xf32> to vector<32x128xf32>
    %13 = arith.addf %10, %12 : vector<32x128xf32>
    %cst_11 = arith.constant 0.000000e+00 : f32
    %14 = vector.broadcast %cst_11 : f32 to vector<32x128xf32>
    %15 = arith.maximumf %13, %14 : vector<32x128xf32>
    %16 = arith.truncf %15 : vector<32x128xf32> to vector<32x128xbf16>
    %c0_12 = arith.constant 0 : index
    %c0_13 = arith.constant 0 : index
    %17 = vector.load %arg7[%c0_12, %c0_13] : memref<8x32xbf16, #tpu.memory_space<vmem>>, vector<8x32xbf16>
    %cst_14 = arith.constant dense<0.000000e+00> : vector<8x128xf32>
    %18 = tpu.matmul %17, %16, %cst_14 {dimension_numbers = #tpu.dot_dimension_numbers<[1], [0], [0], [1], [0, 0, 1, 1], [], []>} : vector<8x32xbf16>, vector<32x128xbf16>, vector<8x128xf32> -> vector<8x128xf32>
    %c0_15 = arith.constant 0 : index
    %c0_16 = arith.constant 0 : index
    %19 = vector.load %arg8[%c0_15, %c0_16] : memref<8x1xf32, #tpu.memory_space<vmem>>, vector<8x1xf32>
    %20 = vector.broadcast %19 : vector<8x1xf32> to vector<8x128xf32>
    %21 = arith.addf %18, %20 : vector<8x128xf32>
    %22 = vector.extract_strided_slice %21 {offsets = [0, 0], sizes = [1, 128], strides = [1, 1]} : vector<8x128xf32> to vector<1x128xf32>
    %c0_i32 = arith.constant 0 : i32
    %23 = vector.broadcast %c0_i32 : i32 to vector<1x128xi32>
    %24 = vector.extract_strided_slice %21 {offsets = [1, 0], sizes = [1, 128], strides = [1, 1]} : vector<8x128xf32> to vector<1x128xf32>
    %25 = arith.cmpf ogt, %24, %22 : vector<1x128xf32>
    %c1_i32 = arith.constant 1 : i32
    %26 = vector.broadcast %c1_i32 : i32 to vector<1x128xi32>
    %27 = arith.select %25, %26, %23 : vector<1x128xi1>, vector<1x128xi32>
    %c0_17 = arith.constant 0 : index
    %c0_18 = arith.constant 0 : index
    %28 = vector.load %arg9[%c0_17, %c0_18] : memref<1x128xi32, #tpu.memory_space<vmem>>, vector<1x128xi32>
    tpu.vector_store %arg9[%c0_17, %c0_18], %27 {strides = array<i32>} : memref<1x128xi32, #tpu.memory_space<vmem>>, vector<1x128xi32>,
    return
  }
  func.func @transform_0(%arg0: i32, %arg1: memref<1xi32, #tpu.memory_space<smem>>) -> (i32, i32) {
    %c0_i32 = arith.constant 0 : i32
    %c0_i32_0 = arith.constant 0 : i32
    return %c0_i32, %arg0 : i32, i32
  }
  func.func @transform_1(%arg0: i32, %arg1: memref<1xi32, #tpu.memory_space<smem>>) -> (i32, i32) {
    %c0_i32 = arith.constant 0 : i32
    %c0_i32_0 = arith.constant 0 : i32
    %c0_i32_1 = arith.constant 0 : i32
    return %c0_i32, %c0_i32_0 : i32, i32
  }
  func.func @transform_2(%arg0: i32, %arg1: memref<1xi32, #tpu.memory_space<smem>>) -> (i32, i32) {
    %c0_i32 = arith.constant 0 : i32
    %c0_i32_0 = arith.constant 0 : i32
    %c0_i32_1 = arith.constant 0 : i32
    return %c0_i32, %c0_i32_0 : i32, i32
  }
  func.func @transform_3(%arg0: i32, %arg1: memref<1xi32, #tpu.memory_space<smem>>) -> (i32, i32) {
    %c0_i32 = arith.constant 0 : i32
    %c0_i32_0 = arith.constant 0 : i32
    %c0_i32_1 = arith.constant 0 : i32
    return %c0_i32, %c0_i32_0 : i32, i32
  }
  func.func @transform_4(%arg0: i32, %arg1: memref<1xi32, #tpu.memory_space<smem>>) -> (i32, i32) {
    %c0_i32 = arith.constant 0 : i32
    %c0_i32_0 = arith.constant 0 : i32
    %c0_i32_1 = arith.constant 0 : i32
    return %c0_i32, %c0_i32_0 : i32, i32
  }
  func.func @transform_5(%arg0: i32, %arg1: memref<1xi32, #tpu.memory_space<smem>>) -> (i32, i32) {
    %c0_i32 = arith.constant 0 : i32
    %c0_i32_0 = arith.constant 0 : i32
    %c0_i32_1 = arith.constant 0 : i32
    return %c0_i32, %c0_i32_0 : i32, i32
  }
  func.func @transform_6(%arg0: i32, %arg1: memref<1xi32, #tpu.memory_space<smem>>) -> (i32, i32) {
    %c0_i32 = arith.constant 0 : i32
    %c0_i32_0 = arith.constant 0 : i32
    %c0_i32_1 = arith.constant 0 : i32
    return %c0_i32, %c0_i32_0 : i32, i32
  }
  func.func @transform_7(%arg0: i32, %arg1: memref<1xi32, #tpu.memory_space<smem>>) -> (i32, i32) {
    %c0_i32 = arith.constant 0 : i32
    %c0_i32_0 = arith.constant 0 : i32
    return %c0_i32, %arg0 : i32, i32
  }
}

</mosaic_0001>

<bundles_post_ra>
// kernel: policy_forward.1
= control target key start
LH: loop header
LB: loop body
LE: loop exit
PB: predicated region body
PF: predicated region fallthrough
CT: control target
= control target key end

     0   :  { %vm119_vm0 = vcmask 1041408   ;;  %v310_v1 = vmov 0   ;;  %vm106_vm1 = vcmask 31744   ;;  %vm202_vm2 = vcmask 523264   ;;  %s430_s1 = inlined_call_operand.vmem [shape: bf16[4,128], index: 1, kind: input, shape index: {}]   ;;  %s431_s2 = inlined_call_operand.vmem [shape: bf16[64,4], index: 2, kind: input, shape index: {}]   ;;  %s432_s3 = inlined_call_operand.vmem [shape: f32[64,1], index: 3, kind: input, shape index: {}]   ;;  %s433_s0 = inlined_call_operand.<no memory space> [shape: s32[1], index: 0, kind: input, shape index: {}]   ;;  %s434_s5 = inlined_call_operand.vmem [shape: f32[32,1], index: 5, kind: input, shape index: {}]   ;;  %s435_s7 = inlined_call_operand.vmem [shape: f32[8,1], index: 7, kind: input, shape index: {}]   ;;  %s436_s4 = inlined_call_operand.vmem [shape: bf16[32,64], index: 4, kind: input, shape index: {}]   ;;  %s437_s6 = inlined_call_operand.vmem [shape: bf16[8,32], index: 6, kind: input, shape index: {}]   ;;  %s438_s8 = inlined_call_operand.vmem [shape: s32[1,128], index: 8, kind: output, shape index: {}]  }
   0x1   :  { %v29_v0 = vld [vmem:[%s430_s1] sm:$0x3]  ;;  %307 = vset.pattern.permute.xlu0 %v310_v1  ;;  %v44_v2 = vld [vmem:[%s432_s3 + $0x30] sm:$0xff]  ;;  %308 = vset.pattern.permute.xlu1 %v310_v1  ;;  %v45_v8 = vld [vmem:[%s432_s3 + $0x38] sm:$0xff]  ;;  %vm241_vm3 = vcmask 261120  }
   0x2   :  { %v121_v3 = vsel %vm119_vm0, %v29_v0, 0  ;;  %v301_v4 = vld [vmem:[%s431_s2 + $0x10] sm:$0xff]  ;;  %78 = vperm.xlu0 %307, %v44_v2   ;;  %v299_v5 = vld [vmem:[%s431_s2] sm:$0xff]  ;;  %309 = vset.pattern.permute.xlu2 %v310_v1  ;;  %v43_v9 = vld [vmem:[%s432_s3 + $0x28] sm:$0xff] }
   0x3   :  { %v42_v6 = vld [vmem:[%s432_s3 + $0x20] sm:$0xff]  ;;  %305 = vmatpush.bf16.msra.mxu3 %v121_v3  ;;  %130 = vmatpush.bf16.msra.mxu0 %v121_v3  ;;  %v40_v7 = vld [vmem:[%s432_s3 + $0x10] sm:$0xff]  ;;  %v41_v10 = vld [vmem:[%s432_s3 + $0x18] sm:$0xff] }
   0x4   :  { %68 = vperm.xlu1 %308, %v42_v6   ;;  %58 = vperm.xlu2 %309, %v40_v7   ;;  %v38_v11 = vld [vmem:[%s432_s3] sm:$0xff]  ;;  %v39_v12 = vld [vmem:[%s432_s3 + $0x8] sm:$0xff]  ;;  %v302_v13 = vld [vmem:[%s431_s2 + $0x18] sm:$0xff] }
   0x5   :  { %v300_v14 = vld [vmem:[%s431_s2 + $0x8] sm:$0xff]  ;;  %v170_v15 = vld [vmem:[%s434_s5 + $0x10] sm:$0xff]  ;;  %v171_v16 = vld [vmem:[%s434_s5 + $0x18] sm:$0xff] }
   0x6   :  { %286 = vmatmul.msk.bf16.vlgmr.msra.gmra.mxu3 %vm106_vm1, %v301_v4  ;;  %284 = vmatmul.msk.bf16.vlgmr.msra.gmra.mxu0 %vm106_vm1, %v299_v5  ;;  %v168_v17 = vld [vmem:[%s434_s5] sm:$0xff]  ;;  %v169_v18 = vld [vmem:[%s434_s5 + $0x8] sm:$0xff] }
   0x7   :  { %v235_v19 = vld [vmem:[%s435_s7] sm:$0xff]  ;;  %v304_v57 = vld [vmem:[%s436_s4 + $0x8] sm:$0xff] }
   0x8   :  { %v303_v56 = vld [vmem:[%s436_s4] sm:$0xff] }
   0xa   :  { %83 = vperm.xlu0 %307, %v45_v8  }
   0xc   :  { %73 = vperm.xlu1 %308, %v43_v9   ;;  %63 = vperm.xlu2 %309, %v41_v10  }
  0x12   :  { %48 = vperm.xlu0 %307, %v38_v11  }
  0x14   :  { %53 = vperm.xlu1 %308, %v39_v12   ;;  %184 = vperm.xlu2 %309, %v170_v15  }
  0x16   :  { %287 = vmatmul.msk.bf16.gmra.mxu3 %vm106_vm1, %v302_v13  ;;  %285 = vmatmul.msk.bf16.gmra.mxu0 %vm106_vm1, %v300_v14  ;;  %v234_v13 = vld [vmem:[%s437_s6] sm:$0xf] }
  0x1a   :  { %189 = vperm.xlu0 %307, %v171_v16  }
  0x1c   :  { %174 = vperm.xlu1 %308, %v168_v17   ;;  %179 = vperm.xlu2 %309, %v169_v18  }
  0x22   :  { %238 = vperm.xlu0 %307, %v235_v19  }
  0x5e   :  { %v59_v28 = vpop.permute.xlu2 %58 }
  0x66   :  { %v64_v39 = vpop.permute.xlu2 %63 }
  0x6e   :  { %v185_v60 = vpop.permute.xlu2 %184 }
  0x74   :  { %v79_v25 = vpop.permute.xlu0 %78 }
  0x76   :  { %v69_v24 = vpop.permute.xlu1 %68  ;;  %v180_v62 = vpop.permute.xlu2 %179 }
  0x7c   :  { %v84_v30 = vpop.permute.xlu0 %83 }
  0x7e   :  { %v74_v29 = vpop.permute.xlu1 %73 }
  0x83   :  { %v132_v20 = vpop.f32.mrf.mxu0 }
  0x84   :  { %v49_v45 = vpop.permute.xlu0 %48 }
  0x85   :  { %v133_v47 = vadd.f32 %v132_v20, %v49_v45 }
  0x86   :  { %v54_v44 = vpop.permute.xlu1 %53 }
  0x87   :  { %v152_v52 = vmax.f32 %v133_v47, 0.0 }
  0x89   :  { %v142_v21 = vpop.f32.mrf.mxu3 }
  0x8a   :  { %v143_v36 = vadd.f32 %v142_v21, %v69_v24 }
  0x8b   :  { %v134_v22 = vpop.f32.mrf.mxu0 }
  0x8c   :  { %v156_v46 = vmax.f32 %v143_v36, 0.0  ;;  %v135_v48 = vadd.f32 %v134_v22, %v54_v44  ;;  %v190_v0 = vpop.permute.xlu0 %189 }
  0x8e   :  { %v153_v53 = vmax.f32 %v135_v48, 0.0  ;;  %v175_v5 = vpop.permute.xlu1 %174 }
  0x90   :  { %v160_v55 = vpack.c.bf16 %v153_v53, %v152_v52 }
  0x91   :  { %v144_v23 = vpop.f32.mrf.mxu3 }
  0x92   :  { %v145_v33 = vadd.f32 %v144_v23, %v74_v29 }
  0x93   :  { %v137_v26 = vpop.f32.mrf.mxu0 }
  0x94   :  { %v157_v40 = vmax.f32 %v145_v33, 0.0  ;;  %v138_v41 = vadd.f32 %v137_v26, %v59_v28  ;;  %v239_v14 = vpop.permute.xlu0 %238 }
  0x96   :  { %v154_v49 = vmax.f32 %v138_v41, 0.0  ;;  %v162_v51 = vpack.c.bf16 %v157_v40, %v156_v46 }
  0x99   :  { %v147_v27 = vpop.f32.mrf.mxu3 }
  0x9a   :  { %v148_v31 = vadd.f32 %v147_v27, %v79_v25 }
  0x9b   :  { %v139_v35 = vpop.f32.mrf.mxu0 }
  0x9c   :  { %v158_v37 = vmax.f32 %v148_v31, 0.0  ;;  %v140_v42 = vadd.f32 %v139_v35, %v64_v39 }
  0x9e   :  { %v155_v50 = vmax.f32 %v140_v42, 0.0 }
  0xa0   :  { %v161_v54 = vpack.c.bf16 %v155_v50, %v154_v49 }
  0xa1   :  { %v149_v32 = vpop.f32.mrf.mxu3 }
  0xa2   :  { %v150_v34 = vadd.f32 %v149_v32, %v84_v30 }
  0xa4   :  { %v159_v38 = vmax.f32 %v150_v34, 0.0 }
  0xa6   :  { %v163_v43 = vpack.c.bf16 %v159_v38, %v158_v37 }
  0xa8   :  { %213 = vmatpush.bf16.msra.mxu1 %v163_v43 }
  0xac   :  { %214 = vmatpush.bf16.msra.mxu1 %v162_v51 }
  0xb0   :  { %215 = vmatpush.bf16.msra.mxu1 %v161_v54 }
  0xb4   :  { %216 = vmatpush.bf16.msra.mxu1 %v160_v55 }
  0xb7   :  { %296 = vmatmul.msk.bf16.vlgmr.msra.gmra.mxu1 %vm202_vm2, %v303_v56 }
  0xc7   :  { %297 = vmatmul.msk.bf16.gmra.mxu1 %vm202_vm2, %v304_v57 }
 0x134   :  { %v218_v58 = vpop.f32.mrf.mxu1 }
 0x135   :  { %v219_v6 = vadd.f32 %v218_v58, %v175_v5 }
 0x137   :  { %v228_v11 = vmax.f32 %v219_v6, 0.0 }
 0x13c   :  { %v220_v59 = vpop.f32.mrf.mxu1 }
 0x13d   :  { %v221_v3 = vadd.f32 %v220_v59, %v180_v62 }
 0x13f   :  { %v229_v9 = vmax.f32 %v221_v3, 0.0 }
 0x141   :  { %v232_v12 = vpack.c.bf16 %v229_v9, %v228_v11 }
 0x144   :  { %v223_v61 = vpop.f32.mrf.mxu1 }
 0x145   :  { %v224_v63 = vadd.f32 %v223_v61, %v185_v60 }
 0x147   :  { %v230_v7 = vmax.f32 %v224_v63, 0.0 }
 0x14c   :  { %v225_v2 = vpop.f32.mrf.mxu1 }
 0x14d   :  { %v226_v4 = vadd.f32 %v225_v2, %v190_v0 }
 0x14f   :  { %v231_v8 = vmax.f32 %v226_v4, 0.0 }
 0x151   :  { %v233_v10 = vpack.c.bf16 %v231_v8, %v230_v7 }
 0x153   :  { %251 = vmatpush.bf16.msra.mxu2 %v233_v10 }
 0x157   :  { %252 = vmatpush.bf16.msra.mxu2 %v232_v12 }
 0x15a   :  { %298 = vmatmul.msk.bf16.vlgmr.msra.gmra.mxu2 %vm241_vm3, %v234_v13 }
 0x1dd   :  { %v254_v15 = vpop.f32.mrf.mxu2 }
 0x1de   :  { %v255_v16 = vadd.f32 %v254_v15, %v239_v14 }
 0x1e0   :  { %v259_v17 = vrot.slane %v255_v16, 7 }
 0x1e2   :  { %vm261_vm4 = vcmp.gt.f32.partialorder %v255_v16, %v259_v17 }
 0x1e3   :  { %v262_v18 = vsel %vm261_vm4, 1, %v310_v1 }
 0x1e4   :  { %263 = vst [vmem:[%s438_s8 - $0x1] sm:$0x2] %v262_v18 }
 0x1e5   :  { %v256_v19 = vpop.f32.mrf.mxu2 }

</bundles_post_ra>
